<compile_context>
chip_gen: v7x
topology: tpu7x:2x2x1
jax: 0.10.0
libtpu: 0.0.40
codegen_flags: <defaults>
</compile_context>

<pallas_src>
import numpy as np
import jax
import jax.numpy as jnp
from jax import lax
from jax.experimental import pallas as pl
from jax.experimental.pallas import tpu as pltpu


# ----------------------------------------------------------------------------
# Helpers: sizing / tiling
# ----------------------------------------------------------------------------
def _round_up(x, m):
    return (x + m - 1) // m * m


def _cdiv(a, b):
    return -(-a // b)


def _vmem_capacity_bytes():
    """Per-core VMEM capacity; conservative fallback (v7x = 64 MiB/TC)."""
    try:
        info = pltpu.get_tpu_info()
        cap = getattr(info, "vmem_capacity_bytes", None)
        if cap:
            return int(cap)
    except Exception:
        pass
    return 64 * 1024 * 1024


def _pick_k_tile(K, tk_max):
    """Full K if small; else the largest MXU-friendly tile that divides K
    evenly (prefer 256-multiples, then 128); else tk_max with zero padding."""
    if K <= tk_max:
        return K, K
    for step in (256, 128):
        start = tk_max - (tk_max % step)
        for tk in range(start, step - 1, -step):
            if K % tk == 0:
                return tk, K
    return tk_max, _round_up(K, tk_max)


def _tile_bytes(tm, tk, Vw, D):
    """Approximate VMEM footprint of one grid step (double-buffered pipeline)."""
    return (2 * tm * tk * 4        # x tile, f32, double buffered
            + 2 * tk * Vw * 2      # encoder-weight tile, bf16, double buffered
            + 2 * Vw * D * 4       # projection, f32, double buffered
            + 2 * tm * D * 4       # output tile, f32, double buffered
            + tm * Vw * 4)         # f32 accumulator scratch


def _choose_tm(M, tk, Vw, D, budget, tm_cap=1024):
    """Pick the m-tile: as big as the VMEM budget allows (fewer weight
    re-streams), >= 2 m-blocks when batch permits (v7x megacore), minimal
    batch padding, multiple of 8 (f32 sublane)."""
    Mp0 = _round_up(max(M, 8), 8)
    tm_fit = 8
    for cand in (1024, 768, 512, 384, 256, 192, 128, 96, 64, 48, 32, 16, 8):
        if cand <= tm_cap and _tile_bytes(cand, tk, Vw, D) <= budget:
            tm_fit = cand
            break
    if Mp0 <= 8:
        return 8, Mp0
    nm = max(2, _cdiv(Mp0, tm_fit))          # >=2 parallel m-blocks when possible
    tm = min(_round_up(_cdiv(Mp0, nm), 8), tm_fit)
    Mp = _round_up(Mp0, tm)
    return tm, Mp


# ----------------------------------------------------------------------------
# Fused tower kernel:
#   acc  = sum_k  bf16(x[:, k-tile]) @ W_enc[k-tile, :]   (MXU, f32 accumulate)
#   proj = acc @ projection                               (f32 MXU, once per m-block)
#   out  = proj * rsqrt(max(sum(proj^2), eps^2))          (VPU / EUP rsqrt)
# ----------------------------------------------------------------------------
def _tower_kernel(x_ref, w_ref, proj_ref, out_ref, acc_ref):
    k = pl.program_id(1)

    @pl.when(k == 0)
    def _init():
        acc_ref[...] = jnp.zeros_like(acc_ref)

    # In-kernel bf16 cast of the activation tile: x stays f32 in HBM, no
    # wrapper-side pad+cast pass; VPU cast is hidden under the MXU.
    a = x_ref[...].astype(jnp.bfloat16)
    acc_ref[...] += jnp.dot(a, w_ref[...], preferred_element_type=jnp.float32)

    @pl.when(k == pl.num_programs(1) - 1)
    def _finalize():
        feat = acc_ref[...]                                    # (tm, Vw) f32
        # Projection in f32 with the f32 accumulator as LHS (precision);
        # tiny relative to the encoder GEMM and runs once per m-block.
        proj = jnp.dot(feat, proj_ref[...],
                       preferred_element_type=jnp.float32)     # (tm, D) f32
        # F.normalize(x, dim=-1) == x / max(||x||_2, 1e-12)
        sumsq = jnp.sum(proj * proj, axis=-1, keepdims=True)
        inv = lax.rsqrt(jnp.maximum(sumsq, 1e-24))             # EUP rsqrt (free slot)
        out_ref[...] = (proj * inv).astype(out_ref.dtype)


class FusedTower:
    """normalize((x @ w_enc) @ projection, axis=-1) as one pallas_call.

    Weights are cast/padded once at construction (bf16 encoder weights,
    f32 projection); only the activation-side tiling depends on the batch.
    """

    def __init__(self, w_enc, projection, *, tk_max=2048):
        K, Vw = w_enc.shape
        Vw2, D = projection.shape
        assert Vw == Vw2
        self.K, self.Vw, self.D = K, Vw, D

        cap = _vmem_capacity_bytes()
        self.vmem_budget = int(cap * 0.70)
        self.vmem_limit_bytes = int(cap * 0.85)

        # K tile: big (amortize per-step overhead), shrunk only if a 128-row
        # m-block would not fit the per-generation VMEM budget.
        while True:
            tk, Kp = _pick_k_tile(K, tk_max)
            if tk <= 128 or _tile_bytes(128, tk, Vw, D) <= self.vmem_budget:
                break
            tk_max = max(128, tk_max // 2)
        self.tk, self.Kp = tk, Kp

        # One-time weight cast / pad (review: removes per-call pad+cast pass).
        wb = w_enc.astype(jnp.bfloat16)
        if Kp != K:
            wb = jnp.zeros((Kp, Vw), jnp.bfloat16).at[:K, :].set(wb)
        self.wb = wb
        self.proj = projection.astype(jnp.float32)   # small; keep f32 for parity

    def __call__(self, x):
        M, K = x.shape
        assert K == self.K
        tk, Kp, Vw, D = self.tk, self.Kp, self.Vw, self.D

        tm, Mp = _choose_tm(M, tk, Vw, D, self.vmem_budget)
        if Mp != M or Kp != K:
            xb = jnp.zeros((Mp, Kp), jnp.float32).at[:M, :K].set(
                x.astype(jnp.float32))
        else:
            xb = x.astype(jnp.float32)

        nm, nk = Mp // tm, Kp // tk

        cost = pl.CostEstimate(
            flops=2 * Mp * Kp * Vw + 2 * Mp * Vw * D,
            transcendentals=Mp,
            bytes_accessed=(Mp * Kp * 4            # x streamed once, f32
                            + nm * Kp * Vw * 2     # encoder weights: re-streamed per m-block
                            + Vw * D * 4           # projection (resident)
                            + Mp * D * 4),         # output
        )

        out = pl.pallas_call(
            _tower_kernel,
            out_shape=jax.ShapeDtypeStruct((Mp, D), jnp.float32),
            grid_spec=pltpu.PrefetchScalarGridSpec(
                num_scalar_prefetch=0,
                grid=(nm, nk),
                in_specs=[
                    pl.BlockSpec((tm, tk), lambda i, k: (i, k)),   # x tile (f32)
                    pl.BlockSpec((tk, Vw), lambda i, k: (k, 0)),   # encoder weight tile (bf16)
                    # Constant-index projection block (resident across the grid).
                    # TODO(synk): single-buffer it (pipeline_mode=pl.Buffered(1))
                    # once that path is verified on all target generations.
                    pl.BlockSpec((Vw, D), lambda i, k: (0, 0)),
                ],
                out_specs=pl.BlockSpec((tm, D), lambda i, k: (i, 0)),
                scratch_shapes=[pltpu.VMEM((tm, Vw), jnp.float32)],
            ),
            compiler_params=pltpu.CompilerParams(
                dimension_semantics=("parallel", "arbitrary"),
                vmem_limit_bytes=self.vmem_limit_bytes,
            ),
            cost_estimate=cost,
        )(xb, self.wb, self.proj)
        return out[:M]   # drop padded batch rows (they normalize to 0)


# ----------------------------------------------------------------------------
# CLIP module (JAX / Pallas)
# ----------------------------------------------------------------------------
class CLIPPallas:
    def __init__(self, embed_dim, vision_width, text_width,
                 img_flat_dim, txt_model_dim, vocab_size, key):
        k1, k2, k3, k4, k5 = jax.random.split(key, 5)

        # CLIP's own parameters: trunc_normal_ with std = width**-0.5,
        # truncated at +/- 2 std (matching timm's trunc_normal_).
        self.image_projection = (
            jax.random.truncated_normal(k1, -2.0, 2.0, (vision_width, embed_dim),
                                        jnp.float32) * vision_width ** -0.5)
        self.text_projection = (
            jax.random.truncated_normal(k2, -2.0, 2.0, (text_width, embed_dim),
                                        jnp.float32) * text_width ** -0.5)
        self.logit_scale = jnp.asarray(np.log(1.0 / 0.07), jnp.float32)

        # TODO(synk): the real vision_model / text_model are injected nn.Modules
        # (arbitrary backbones); here they are deterministic linear stand-ins
        # whose matmuls are fused with the CLIP projection inside FusedTower.
        self.vis_w = jax.random.normal(k3, (img_flat_dim, vision_width),
                                       jnp.float32) * img_flat_dim ** -0.5
        self.txt_embed_table = jax.random.normal(k4, (vocab_size, txt_model_dim),
                                                 jnp.float32) * 0.02
        self.txt_w = jax.random.normal(k5, (txt_model_dim, text_width),
                                       jnp.float32) * txt_model_dim ** -0.5

        # Weight cast / pad happens ONCE here, not per forward call.
        self.vision_tower = FusedTower(self.vis_w, self.image_projection)
        self.text_tower = FusedTower(self.txt_w, self.text_projection)

    def forward(self, image, text):
        B = image.shape[0]
        # Vision tower: flatten NCHW -> fused (encoder @ projection @ normalize).
        img_embed = self.vision_tower(image.reshape(B, -1))

        # Text tower: token-embedding gather + mean pool stay in XLA (glue);
        # pooled features go through the fused Pallas tower.
        pooled = jnp.mean(jnp.take(self.txt_embed_table, text, axis=0), axis=1)
        txt_embed = self.text_tower(pooled)

        # Scalar exp stays in XLA (single scalar; not a vector-kernel candidate).
        scale = jnp.exp(self.logit_scale)
        return img_embed, txt_embed, scale


# ----------------------------------------------------------------------------
if __name__ == "__main__":
    B, C, H, W = 2, 3, 16, 16
    L, VOCAB = 8, 32
    TXT_MODEL_DIM = 64
    VISION_WIDTH, TEXT_WIDTH, EMBED_DIM = 256, 128, 128

    key = jax.random.PRNGKey(0)
    k_img, k_txt, k_params = jax.random.split(key, 3)

    image = jax.random.normal(k_img, (B, C, H, W), jnp.float32)       # NCHW
    text = jax.random.randint(k_txt, (B, L), 0, VOCAB, jnp.int32)

    model = CLIPPallas(EMBED_DIM, VISION_WIDTH, TEXT_WIDTH,
                       img_flat_dim=C * H * W, txt_model_dim=TXT_MODEL_DIM,
                       vocab_size=VOCAB, key=k_params)

    img_embed, txt_embed, logit_scale_exp = model.forward(image, text)
    jax.block_until_ready((img_embed, txt_embed, logit_scale_exp))

    # Pure-JAX f32 reference for self-verification.
    vis_ref = image.reshape(B, -1) @ model.vis_w
    txt_ref = jnp.mean(jnp.take(model.txt_embed_table, text, axis=0), axis=1) @ model.txt_w
    ie = vis_ref @ model.image_projection
    te = txt_ref @ model.text_projection
    ie_n = ie / jnp.maximum(jnp.linalg.norm(ie, axis=-1, keepdims=True), 1e-12)
    te_n = te / jnp.maximum(jnp.linalg.norm(te, axis=-1, keepdims=True), 1e-12)

    np.testing.assert_allclose(np.asarray(img_embed), np.asarray(ie_n),
                               rtol=2e-2, atol=2e-2)
    np.testing.assert_allclose(np.asarray(txt_embed), np.asarray(te_n),
                               rtol=2e-2, atol=2e-2)
    np.testing.assert_allclose(float(logit_scale_exp), float(np.exp(np.log(1 / 0.07))),
                               rtol=1e-4)

    print("KERNEL_OK")
</pallas_src>

<mosaic_0001>
module attributes {stable_mosaic.version = 11 : i64} {
  func.func @_tower_kernel(%arg0: i32, %arg1: i32, %arg2: memref<8x768xf32, #tpu.memory_space<vmem>>, %arg3: memref<768x256xbf16, #tpu.memory_space<vmem>>, %arg4: memref<256x128xf32, #tpu.memory_space<vmem>>, %arg5: memref<8x128xf32, #tpu.memory_space<vmem>>, %arg6: memref<8x256xf32, #tpu.memory_space<vmem>>) attributes {dimension_semantics = [#tpu.dimension_semantics<parallel>, #tpu.dimension_semantics<arbitrary>], iteration_bounds = array<i64: 1, 1>, scalar_prefetch = 0 : i64, scratch_operands = 1 : i64, tpu.core_type = #tpu.core_type<tc>, window_params = [{transform_indices = @transform_0, window_bounds = array<i64: 8, 768>}, {transform_indices = @transform_1, window_bounds = array<i64: 768, 256>}, {pipeline_mode = #tpu.pipeline_mode<synchronous>, transform_indices = @transform_2, window_bounds = array<i64: 256, 128>}, {transform_indices = @transform_3, window_bounds = array<i64: 8, 128>}]} {
    %c0_i32 = arith.constant 0 : i32
    %0 = arith.cmpi eq, %arg1, %c0_i32 : i32
    %1 = arith.extui %0 : i1 to i32
    %c0_i32_0 = arith.constant 0 : i32
    %2 = arith.cmpi ne, %1, %c0_i32_0 : i32
    scf.if %2 {
      %cst_10 = arith.constant 0.000000e+00 : f32
      %13 = vector.broadcast %cst_10 : f32 to vector<8x256xf32>
      %c0_11 = arith.constant 0 : index
      %c0_12 = arith.constant 0 : index
      %14 = vector.load %arg6[%c0_11, %c0_12] : memref<8x256xf32, #tpu.memory_space<vmem>>, vector<8x256xf32>
      tpu.vector_store %arg6[%c0_11, %c0_12], %13 {strides = array<i32>} : memref<8x256xf32, #tpu.memory_space<vmem>>, vector<8x256xf32>,
    } else {
    }
    %c0 = arith.constant 0 : index
    %c0_1 = arith.constant 0 : index
    %3 = vector.load %arg2[%c0, %c0_1] : memref<8x768xf32, #tpu.memory_space<vmem>>, vector<8x768xf32>
    %4 = arith.truncf %3 : vector<8x768xf32> to vector<8x768xbf16>
    %c0_2 = arith.constant 0 : index
    %c0_3 = arith.constant 0 : index
    %5 = vector.load %arg6[%c0_2, %c0_3] : memref<8x256xf32, #tpu.memory_space<vmem>>, vector<8x256xf32>
    %c0_4 = arith.constant 0 : index
    %c0_5 = arith.constant 0 : index
    %6 = vector.load %arg3[%c0_4, %c0_5] : memref<768x256xbf16, #tpu.memory_space<vmem>>, vector<768x256xbf16>
    %cst = arith.constant dense<0.000000e+00> : vector<8x256xf32>
    %7 = tpu.matmul %4, %6, %cst {dimension_numbers = #tpu.dot_dimension_numbers<[1], [0], [0], [1], [0, 0, 1, 1], [], []>} : vector<8x768xbf16>, vector<768x256xbf16>, vector<8x256xf32> -> vector<8x256xf32>
    %8 = arith.addf %5, %7 : vector<8x256xf32>
    %c0_6 = arith.constant 0 : index
    %c0_7 = arith.constant 0 : index
    %9 = vector.load %arg6[%c0_6, %c0_7] : memref<8x256xf32, #tpu.memory_space<vmem>>, vector<8x256xf32>
    tpu.vector_store %arg6[%c0_6, %c0_7], %8 {strides = array<i32>} : memref<8x256xf32, #tpu.memory_space<vmem>>, vector<8x256xf32>,
    %c0_i32_8 = arith.constant 0 : i32
    %10 = arith.cmpi eq, %arg1, %c0_i32_8 : i32
    %11 = arith.extui %10 : i1 to i32
    %c0_i32_9 = arith.constant 0 : i32
    %12 = arith.cmpi ne, %11, %c0_i32_9 : i32
    scf.if %12 {
      %c0_10 = arith.constant 0 : index
      %c0_11 = arith.constant 0 : index
      %13 = vector.load %arg6[%c0_10, %c0_11] : memref<8x256xf32, #tpu.memory_space<vmem>>, vector<8x256xf32>
      %c0_12 = arith.constant 0 : index
      %c0_13 = arith.constant 0 : index
      %14 = vector.load %arg4[%c0_12, %c0_13] : memref<256x128xf32, #tpu.memory_space<vmem>>, vector<256x128xf32>
      %cst_14 = arith.constant dense<0.000000e+00> : vector<8x128xf32>
      %15 = tpu.matmul %13, %14, %cst_14 {dimension_numbers = #tpu.dot_dimension_numbers<[1], [0], [0], [1], [0, 0, 1, 1], [], []>} : vector<8x256xf32>, vector<256x128xf32>, vector<8x128xf32> -> vector<8x128xf32>
      %16 = arith.mulf %15, %15 : vector<8x128xf32>
      %cst_15 = arith.constant dense<0.000000e+00> : vector<8xf32>
      %17 = vector.multi_reduction <add>, %16, %cst_15 [1] : vector<8x128xf32> to vector<8xf32>
      %18 = vector.shape_cast %17 : vector<8xf32> to vector<8x1xf32>
      %cst_16 = arith.constant 1.000000e-24 : f32
      %19 = vector.broadcast %cst_16 : f32 to vector<8x1xf32>
      %20 = arith.maximumf %18, %19 : vector<8x1xf32>
      %21 = math.rsqrt %20 : vector<8x1xf32>
      %22 = vector.broadcast %21 : vector<8x1xf32> to vector<8x128xf32>
      %23 = arith.mulf %15, %22 : vector<8x128xf32>
      %c0_17 = arith.constant 0 : index
      %c0_18 = arith.constant 0 : index
      %24 = vector.load %arg5[%c0_17, %c0_18] : memref<8x128xf32, #tpu.memory_space<vmem>>, vector<8x128xf32>
      tpu.vector_store %arg5[%c0_17, %c0_18], %23 {strides = array<i32>} : memref<8x128xf32, #tpu.memory_space<vmem>>, vector<8x128xf32>,
    } else {
    }
    return
  }
  func.func @transform_0(%arg0: i32, %arg1: i32) -> (i32, i32) {
    %c0_i32 = arith.constant 0 : i32
    return %arg0, %arg1 : i32, i32
  }
  func.func @transform_1(%arg0: i32, %arg1: i32) -> (i32, i32) {
    %c0_i32 = arith.constant 0 : i32
    %c0_i32_0 = arith.constant 0 : i32
    return %arg1, %c0_i32 : i32, i32
  }
  func.func @transform_2(%arg0: i32, %arg1: i32) -> (i32, i32) {
    %c0_i32 = arith.constant 0 : i32
    %c0_i32_0 = arith.constant 0 : i32
    %c0_i32_1 = arith.constant 0 : i32
    return %c0_i32, %c0_i32_0 : i32, i32
  }
  func.func @transform_3(%arg0: i32, %arg1: i32) -> (i32, i32) {
    %c0_i32 = arith.constant 0 : i32
    %c0_i32_0 = arith.constant 0 : i32
    return %arg0, %c0_i32 : i32, i32
  }
}

</mosaic_0001>

<bundles_post_ra>
// kernel: tpu_custom_call.1
= control target key start
LH: loop header
LB: loop body
LE: loop exit
PB: predicated region body
PF: predicated region fallthrough
CT: control target
= control target key end

     0   :  { %8 = vsyncpa [#allocation4], 0  ;;  %s1402_s0 = inlined_call_operand.hbm [shape: f32[8,768], index: 0, kind: input, shape index: {}]   ;;  %s1403_s1 = inlined_call_operand.hbm [shape: bf16[768,256], index: 1, kind: input, shape index: {}]   ;;  %s1404_s2 = inlined_call_operand.hbm [shape: f32[256,128], index: 2, kind: input, shape index: {}]   ;;  %s1405_s3 = inlined_call_operand.hbm [shape: f32[8,128], index: 3, kind: output, shape index: {}]  }
   0x1   :  { %9 = vsyncpa [#allocation7], 0 }
   0x2   :  { %10 = vsyncpa [#allocation5], 0  ;;  %s1322_s12 = smov [#allocation6]   ;;  %s1228_s16 = scalar_lea.hbm %s1403_s1, 12288 }
   0x3   :  { %s26_s13 = sshll.u32 %s1322_s12, 4  ;;  %p1229_p0 = scmp.ne.s32.totalorder %s1403_s1, %s1228_s16  ;;  %s27_s13 = int_to_ptr.vmem [resolvable:$true] %s26_s13 }
   0x4   :  { %p1232_p1 = scmp.lt.u32.totalorder %s1228_s16, %s1403_s1 }
   0x6   :  { %p1234_p2 = pnand %p1232_p1, %p1229_p0 }
   0x8   :  { %1237 = shalt.err (!%p1234_p2)
}
   0x9   :  { %s1238_s21 = scalar_lea.vmem %s27_s13, 12288  ;;  %p1243_p4 = scmp.lt.s32.totalorder %s27_s13, %s27_s13 }
   0xa   :  { %p1239_p3 = scmp.ne.s32.totalorder %s27_s13, %s1238_s21  ;;  %p1244_p5 = scmp.lt.s32.totalorder %s1238_s21, %s1238_s21 }
   0xc   :  { %p1245_p6 = por %p1244_p5, %p1243_p4 }
   0xe   :  { %p1246_p7 = pnand %p1245_p6, %p1239_p3 }
  0x10   :  { %1249 = shalt.err (!%p1246_p7)
}
  0x11   :  { %s1323_s22 = smov 128   ;;  %s1324_s23 = smov 8  }
  0x12   :  { %32 = dma.hbm_to_vmem [thread:$0]  %s1403_s1, 12288, %s27_s13, [#allocation7], %s1323_s22, %s1323_s22, %s1324_s23  }
  0x13   :  { %s1325_s26 = smov [#allocation3]   ;;  %s1326_s28 = smov [#allocation8]  }
  0x14   :  { %s17_s27 = sshll.u32 %s1325_s26, 4  ;;  %s38_s29 = sshll.u32 %s1326_s28, 4  ;;  %s18_s27 = int_to_ptr.vmem [resolvable:$true] %s17_s27  ;;  %s39_s29 = int_to_ptr.vmem [resolvable:$true] %s38_s29 }
  0x15   :  { %s1250_s5 = scalar_lea.hbm %s1402_s0, 768 }
  0x16   :  { %p1251_p8 = scmp.ne.s32.totalorder %s1402_s0, %s1250_s5  ;;  %p1254_p9 = scmp.lt.u32.totalorder %s1250_s5, %s1402_s0 }
  0x18   :  { %p1256_p10 = pnand %p1254_p9, %p1251_p8 }
  0x1a   :  { %1259 = shalt.err (!%p1256_p10)
}
  0x1b   :  { %s1260_s1 = scalar_lea.vmem %s18_s27, 768  ;;  %p1265_p12 = scmp.lt.s32.totalorder %s18_s27, %s18_s27 }
  0x1c   :  { %p1261_p11 = scmp.ne.s32.totalorder %s18_s27, %s1260_s1  ;;  %p1266_p13 = scmp.lt.s32.totalorder %s1260_s1, %s1260_s1 }
  0x1e   :  { %p1267_p0 = por %p1266_p13, %p1265_p12 }
  0x20   :  { %p1268_p1 = pnand %p1267_p0, %p1261_p11 }
  0x22   :  { %1271 = shalt.err (!%p1268_p1)
}
  0x23   :  { %20 = dma.hbm_to_vmem [thread:$0]  %s1402_s0, 768, %s18_s27, [#allocation4]  }
  0x24   :  { %s1272_s14 = scalar_lea.hbm %s1404_s2, 4096 }
  0x25   :  { %p1273_p2 = scmp.ne.s32.totalorder %s1404_s2, %s1272_s14  ;;  %p1276_p3 = scmp.lt.u32.totalorder %s1272_s14, %s1404_s2 }
  0x27   :  { %p1278_p4 = pnand %p1276_p3, %p1273_p2 }
  0x29   :  { %1281 = shalt.err (!%p1278_p4)
}
  0x2a   :  { %s1282_s19 = scalar_lea.vmem %s39_s29, 4096  ;;  %p1287_p6 = scmp.lt.s32.totalorder %s39_s29, %s39_s29 }
  0x2b   :  { %p1283_p5 = scmp.ne.s32.totalorder %s39_s29, %s1282_s19  ;;  %p1288_p7 = scmp.lt.s32.totalorder %s1282_s19, %s1282_s19 }
  0x2d   :  { %p1289_p8 = por %p1288_p7, %p1287_p6 }
  0x2f   :  { %p1290_p9 = pnand %p1289_p8, %p1283_p5 }
  0x31   :  { %1293 = shalt.err (!%p1290_p9)
}
  0x32   :  { %44 = dma.hbm_to_vmem [thread:$0]  %s1404_s2, 4096, %s39_s29, [#allocation7], %s1323_s22, %s1323_s22, %s1324_s23  }
  0x33   :  { %1316 = dma.done.wait [#allocation4], 768  }
  0x34   :  { %1317 = vsyncadd [#allocation4], 4294966528 }
  0x35   :  { %1318 = dma.done.wait [#allocation7], 16384  }
  0x36   :  { %1319 = vsyncadd [#allocation7], 4294950912  ;;  %v1082_v0 = vld [vmem:[#allocation6 + $0x104] ss:$8 sps:$4 sm:$0xff]   ;;  %v1084_v1 = vld [vmem:[#allocation6 + $0x100] ss:$8 sps:$4 sm:$0xff]  }
  0x37   :  { %691 = vmatprep.subr.bf16.mxu0 %v1082_v0  ;;  %v1085_v2 = vld [vmem:[#allocation6 + $0x114] ss:$8 sps:$4 sm:$0xff]   ;;  %v1087_v3 = vld [vmem:[#allocation6 + $0x110] ss:$8 sps:$4 sm:$0xff]   ;;  %v1088_v4 = vld [vmem:[#allocation6 + $0x124] ss:$8 sps:$4 sm:$0xff]  }
  0x38   :  { %692 = vmatpush1.bf16.msra.mxu0 %v1084_v1  ;;  %v1090_v5 = vld [vmem:[#allocation6 + $0x120] ss:$8 sps:$4 sm:$0xff]   ;;  %v1091_v6 = vld [vmem:[#allocation6 + $0x134] ss:$8 sps:$4 sm:$0xff]   ;;  %v1093_v7 = vld [vmem:[#allocation6 + $0x130] ss:$8 sps:$4 sm:$0xff]  }
  0x39   :  { %693 = vmatprep.subr.bf16.mxu0 %v1085_v2  ;;  %v1094_v8 = vld [vmem:[#allocation6 + $0x144] ss:$8 sps:$4 sm:$0xff]   ;;  %v1096_v9 = vld [vmem:[#allocation6 + $0x140] ss:$8 sps:$4 sm:$0xff]   ;;  %v1097_v10 = vld [vmem:[#allocation6 + $0x154] ss:$8 sps:$4 sm:$0xff]  }
  0x3a   :  { %v1099_v11 = vld [vmem:[#allocation6 + $0x150] ss:$8 sps:$4 sm:$0xff]   ;;  %v1100_v12 = vld [vmem:[#allocation6 + $0x164] ss:$8 sps:$4 sm:$0xff]   ;;  %v1132_v14 = vld [vmem:[#allocation6] ss:$8 sps:$4 sm:$0xff]  }
  0x3b   :  { %v1129_v13 = vld [vmem:[#allocation6 + $0x4] ss:$8 sps:$4 sm:$0xff]   ;;  %v1102_v16 = vld [vmem:[#allocation6 + $0x160] ss:$8 sps:$4 sm:$0xff]   ;;  %v1103_v18 = vld [vmem:[#allocation6 + $0x174] ss:$8 sps:$4 sm:$0xff]  }
  0x3c   :  { %694 = vmatpush1.bf16.msra.mxu0 %v1087_v3  ;;  %v63_v15 = vld [vmem:[#allocation3 + $0x18] sm:$0xff]  ;;  %650 = vmatprep.subr.bf16.mxu1 %v1129_v13  ;;  %v1136_v19 = vld [vmem:[#allocation6 + $0x14] ss:$8 sps:$4 sm:$0xff]   ;;  %v1138_v20 = vld [vmem:[#allocation6 + $0x10] ss:$8 sps:$4 sm:$0xff]   ;;  %s1327_s2 = smov [#allocation9]  }
  0x3d   :  { %695 = vmatprep.subr.bf16.mxu0 %v1088_v4  ;;  %v69_v17 = vpack.c.bf16 %v63_v15, %v63_v15  ;;  %651 = vmatpush1.bf16.msra.mxu1 %v1132_v14  ;;  %v1105_v21 = vld [vmem:[#allocation6 + $0x170] ss:$8 sps:$4 sm:$0xff]   ;;  %v1106_v22 = vld [vmem:[#allocation6 + $0x184] ss:$8 sps:$4 sm:$0xff]   ;;  %v1144_v24 = vld [vmem:[#allocation6 + $0x20] ss:$8 sps:$4 sm:$0xff]  }
  0x3e   :  { %652 = vmatprep.subr.bf16.mxu1 %v1136_v19  ;;  %v1142_v23 = vld [vmem:[#allocation6 + $0x24] ss:$8 sps:$4 sm:$0xff]   ;;  %v1148_v25 = vld [vmem:[#allocation6 + $0x34] ss:$8 sps:$4 sm:$0xff]   ;;  %v1108_v26 = vld [vmem:[#allocation6 + $0x180] ss:$8 sps:$4 sm:$0xff]  }
  0x3f   :  { %723 = vmatprep.mubr.bf16.mxu0 %v69_v17  ;;  %v1109_v27 = vld [vmem:[#allocation6 + $0x194] ss:$8 sps:$4 sm:$0xff]   ;;  %v1150_v28 = vld [vmem:[#allocation6 + $0x30] ss:$8 sps:$4 sm:$0xff]   ;;  %v1154_v29 = vld [vmem:[#allocation6 + $0x44] ss:$8 sps:$4 sm:$0xff]  }
  0x40   :  { %696 = vmatpush1.bf16.msra.mxu0 %v1090_v5  ;;  %v1111_v30 = vld [vmem:[#allocation6 + $0x190] ss:$8 sps:$4 sm:$0xff]   ;;  %v1112_v31 = vld [vmem:[#allocation6 + $0x1a4] ss:$8 sps:$4 sm:$0xff]   ;;  %v1156_v32 = vld [vmem:[#allocation6 + $0x40] ss:$8 sps:$4 sm:$0xff]  }
  0x41   :  { %697 = vmatprep.subr.bf16.mxu0 %v1091_v6  ;;  %653 = vmatpush1.bf16.msra.mxu1 %v1138_v20  ;;  %v1160_v33 = vld [vmem:[#allocation6 + $0x54] ss:$8 sps:$4 sm:$0xff]   ;;  %v1114_v34 = vld [vmem:[#allocation6 + $0x1a0] ss:$8 sps:$4 sm:$0xff]   ;;  %v1162_v36 = vld [vmem:[#allocation6 + $0x50] ss:$8 sps:$4 sm:$0xff]  }
  0x42   :  { %654 = vmatprep.subr.bf16.mxu1 %v1142_v23  ;;  %v1115_v35 = vld [vmem:[#allocation6 + $0x1b4] ss:$8 sps:$4 sm:$0xff]   ;;  %v1166_v37 = vld [vmem:[#allocation6 + $0x64] ss:$8 sps:$4 sm:$0xff]   ;;  %v1117_v38 = vld [vmem:[#allocation6 + $0x1b0] ss:$8 sps:$4 sm:$0xff]  }
  0x43   :  { %v1118_v39 = vld [vmem:[#allocation6 + $0x1c4] ss:$8 sps:$4 sm:$0xff]   ;;  %v1168_v40 = vld [vmem:[#allocation6 + $0x60] ss:$8 sps:$4 sm:$0xff]   ;;  %v1172_v41 = vld [vmem:[#allocation6 + $0x74] ss:$8 sps:$4 sm:$0xff]  }
  0x44   :  { %698 = vmatpush1.bf16.msra.mxu0 %v1093_v7  ;;  %v1120_v42 = vld [vmem:[#allocation6 + $0x1c0] ss:$8 sps:$4 sm:$0xff]   ;;  %v1121_v43 = vld [vmem:[#allocation6 + $0x1d4] ss:$8 sps:$4 sm:$0xff]   ;;  %v1174_v44 = vld [vmem:[#allocation6 + $0x70] ss:$8 sps:$4 sm:$0xff]  }
  0x45   :  { %699 = vmatprep.subr.bf16.mxu0 %v1094_v8  ;;  %655 = vmatpush1.bf16.msra.mxu1 %v1144_v24  ;;  %v1178_v45 = vld [vmem:[#allocation6 + $0x84] ss:$8 sps:$4 sm:$0xff]   ;;  %v1123_v46 = vld [vmem:[#allocation6 + $0x1d0] ss:$8 sps:$4 sm:$0xff]   ;;  %v1180_v48 = vld [vmem:[#allocation6 + $0x80] ss:$8 sps:$4 sm:$0xff]  }
  0x46   :  { %656 = vmatprep.subr.bf16.mxu1 %v1148_v25  ;;  %v1124_v47 = vld [vmem:[#allocation6 + $0x1e4] ss:$8 sps:$4 sm:$0xff]   ;;  %v1184_v49 = vld [vmem:[#allocation6 + $0x94] ss:$8 sps:$4 sm:$0xff]   ;;  %v1126_v50 = vld [vmem:[#allocation6 + $0x1e0] ss:$8 sps:$4 sm:$0xff]  }
  0x47   :  { %v1127_v51 = vld [vmem:[#allocation6 + $0x1f4] ss:$8 sps:$4 sm:$0xff]   ;;  %v1186_v52 = vld [vmem:[#allocation6 + $0x90] ss:$8 sps:$4 sm:$0xff]   ;;  %v1190_v53 = vld [vmem:[#allocation6 + $0xa4] ss:$8 sps:$4 sm:$0xff]  }
  0x48   :  { %700 = vmatpush1.bf16.msra.mxu0 %v1096_v9  ;;  %v1131_v54 = vld [vmem:[#allocation6 + $0x1f0] ss:$8 sps:$4 sm:$0xff]   ;;  %v62_v55 = vld [vmem:[#allocation3 + $0x10] sm:$0xff]  ;;  %v1196_v58 = vld [vmem:[#allocation6 + $0xb4] ss:$8 sps:$4 sm:$0xff]   ;;  %s897_s21 = sshll.u32 %s1327_s2, 4  ;;  %s898_s21 = int_to_ptr.vmem [resolvable:$true] %s897_s21 }
  0x49   :  { %701 = vmatprep.subr.bf16.mxu0 %v1097_v10  ;;  %657 = vmatpush1.bf16.msra.mxu1 %v1150_v28  ;;  %v1135_v56 = vld [vmem:[#allocation6 + $0x204] ss:$8 sps:$4 sm:$0xff]   ;;  %v1192_v57 = vld [vmem:[#allocation6 + $0xa0] ss:$8 sps:$4 sm:$0xff]   ;;  %v68_v59 = vpack.c.bf16 %v62_v55, %v62_v55  ;;  %v61_v61 = vld [vmem:[#allocation3 + $0x8] sm:$0xff]  ;;  %s1294_s22 = scalar_lea.vmem %s898_s21, 128  ;;  %p1299_p11 = scmp.lt.s32.totalorder %s898_s21, %s898_s21 }
  0x4a   :  { %658 = vmatprep.subr.bf16.mxu1 %v1154_v29  ;;  %v1133_v60 = vld [vmem:[#allocation6 + $0x200] ss:$8 sps:$4 sm:$0xff]   ;;  %v1141_v62 = vld [vmem:[#allocation6 + $0x214] ss:$8 sps:$4 sm:$0xff]   ;;  %v1198_v63 = vld [vmem:[#allocation6 + $0xb0] ss:$8 sps:$4 sm:$0xff]   ;;  %v67_v0 = vpack.c.bf16 %v61_v61, %v61_v61  ;;  %p1295_p10 = scmp.ne.s32.totalorder %s898_s21, %s1294_s22  ;;  %p1300_p12 = scmp.lt.s32.totalorder %s1294_s22, %s1294_s22 }
  0x4b   :  { %v1202_v1 = vld [vmem:[#allocation6 + $0xc4] ss:$8 sps:$4 sm:$0xff]   ;;  %v65_v2 = vld [vmem:[#allocation3 + $0x28] sm:$0xff]  ;;  %v1204_v6 = vld [vmem:[#allocation6 + $0xc0] ss:$8 sps:$4 sm:$0xff]  }
  0x4c   :  { %702 = vmatpush1.bf16.msra.mxu0 %v1099_v11  ;;  %682 = vmatprep.mubr.bf16.mxu1 %v67_v0  ;;  %v71_v3 = vpack.c.bf16 %v65_v2, %v65_v2  ;;  %v1139_v4 = vld [vmem:[#allocation6 + $0x210] ss:$8 sps:$4 sm:$0xff]   ;;  %v1147_v5 = vld [vmem:[#allocation6 + $0x224] ss:$8 sps:$4 sm:$0xff]   ;;  %v1208_v7 = vld [vmem:[#allocation6 + $0xd4] ss:$8 sps:$4 sm:$0xff]   ;;  %p1301_p13 = por %p1300_p12, %p1299_p11 }
  0x4d   :  { %703 = vmatprep.subr.bf16.mxu0 %v1100_v12  ;;  %659 = vmatpush1.bf16.msra.mxu1 %v1156_v32  ;;  %v1145_v8 = vld [vmem:[#allocation6 + $0x220] ss:$8 sps:$4 sm:$0xff]   ;;  %v1153_v9 = vld [vmem:[#allocation6 + $0x234] ss:$8 sps:$4 sm:$0xff]   ;;  %v1210_v10 = vld [vmem:[#allocation6 + $0xd0] ss:$8 sps:$4 sm:$0xff]  }
  0x4e   :  { %660 = vmatprep.subr.bf16.mxu1 %v1160_v33  ;;  %v1214_v11 = vld [vmem:[#allocation6 + $0xe4] ss:$8 sps:$4 sm:$0xff]   ;;  %v1151_v12 = vld [vmem:[#allocation6 + $0x230] ss:$8 sps:$4 sm:$0xff]   ;;  %v1216_v14 = vld [vmem:[#allocation6 + $0xe0] ss:$8 sps:$4 sm:$0xff]   ;;  %p1302_p0 = pnand %p1301_p13, %p1295_p10 }
  0x4f   :  { %v1159_v13 = vld [vmem:[#allocation6 + $0x244] ss:$8 sps:$4 sm:$0xff]   ;;  %v1220_v15 = vld [vmem:[#allocation6 + $0xf4] ss:$8 sps:$4 sm:$0xff]   ;;  %v1222_v20 = vld [vmem:[#allocation6 + $0xf0] ss:$8 sps:$4 sm:$0xff]  }
  0x50   :  { %704 = vmatpush1.bf16.msra.mxu0 %v1102_v16  ;;  %v798_v16 = vld [vmem:[#allocation8 + $0x80] sm:$0xff]  ;;  %v799_v17 = vld [vmem:[#allocation8 + $0x88] sm:$0xff]  ;;  %v1165_v19 = vld [vmem:[#allocation6 + $0x254] ss:$8 sps:$4 sm:$0xff]  }
  0x51   :  { %705 = vmatprep.subr.bf16.mxu0 %v1103_v18  ;;  %661 = vmatpush1.bf16.msra.mxu1 %v1162_v36  ;;  %v1157_v18 = vld [vmem:[#allocation6 + $0x240] ss:$8 sps:$4 sm:$0xff]   ;;  %v800_v25 = vld [vmem:[#allocation8 + $0x90] sm:$0xff]  ;;  %v1171_v29 = vld [vmem:[#allocation6 + $0x264] ss:$8 sps:$4 sm:$0xff]  }
  0x52   :  { %662 = vmatprep.subr.bf16.mxu1 %v1166_v37  ;;  %v782_v23 = vld [vmem:[#allocation8] sm:$0xff]  ;;  %v783_v24 = vld [vmem:[#allocation8 + $0x8] sm:$0xff]  ;;  %v784_v32 = vld [vmem:[#allocation8 + $0x10] sm:$0xff] }
  0x53   :  { %v785_v33 = vld [vmem:[#allocation8 + $0x18] sm:$0xff]  ;;  %v1169_v36 = vld [vmem:[#allocation6 + $0x260] ss:$8 sps:$4 sm:$0xff]   ;;  %v1195_v61 = vld [vmem:[#allocation6 + $0x2a4] ss:$8 sps:$4 sm:$0xff]  }
  0x54   :  { %706 = vmatpush1.bf16.msra.mxu0 %v1105_v21  ;;  %v60_v21 = vld [vmem:[#allocation3] sm:$0xff]  ;;  %v1193_v2 = vld [vmem:[#allocation6 + $0x2a0] ss:$8 sps:$4 sm:$0xff]  }
  0x55   :  { %707 = vmatprep.subr.bf16.mxu0 %v1106_v22  ;;  %663 = vmatpush1.bf16.msra.mxu1 %v1168_v40  ;;  %v1038_v22 = vpack.c.bf16 %v799_v17, %v798_v16  ;;  %v66_v28 = vpack.c.bf16 %v60_v21, %v60_v21  ;;  %v1177_v37 = vld [vmem:[#allocation6 + $0x274] ss:$8 sps:$4 sm:$0xff]   ;;  %v786_v40 = vld [vmem:[#allocation8 + $0x20] sm:$0xff]  ;;  %v811_v17 = vld [vmem:[#allocation8 + $0xe8] sm:$0xff] }
  0x56   :  { %664 = vmatprep.subr.bf16.mxu1 %v1172_v41  ;;  %v787_v41 = vld [vmem:[#allocation8 + $0x28] sm:$0xff]  ;;  %v792_v0 = vld [vmem:[#allocation8 + $0x50] sm:$0xff]  ;;  %v810_v16 = vld [vmem:[#allocation8 + $0xe0] sm:$0xff] }
  0x58   :  { %708 = vmatpush1.bf16.msra.mxu0 %v1108_v26  ;;  %v801_v26 = vld [vmem:[#allocation8 + $0x98] sm:$0xff] }
  0x59   :  { %709 = vmatprep.subr.bf16.mxu0 %v1109_v27  ;;  %665 = vmatpush1.bf16.msra.mxu1 %v1174_v44  ;;  %v1163_v27 = vld [vmem:[#allocation6 + $0x250] ss:$8 sps:$4 sm:$0xff]  }
  0x5a   :  { %666 = vmatprep.subr.bf16.mxu1 %v1178_v45  ;;  %v1175_v44 = vld [vmem:[#allocation6 + $0x270] ss:$8 sps:$4 sm:$0xff]   ;;  %v1183_v45 = vld [vmem:[#allocation6 + $0x284] ss:$8 sps:$4 sm:$0xff]  }
  0x5c   :  { %710 = vmatpush1.bf16.msra.mxu0 %v1111_v30  ;;  %v1040_v30 = vpack.c.bf16 %v783_v24, %v782_v23  ;;  %v813_v23 = vld [vmem:[#allocation8 + $0xf8] sm:$0xff] }
  0x5d   :  { %711 = vmatprep.subr.bf16.mxu0 %v1112_v31  ;;  %667 = vmatpush1.bf16.msra.mxu1 %v1180_v48  ;;  %v1042_v31 = vpack.c.bf16 %v801_v26, %v800_v25  ;;  %v788_v48 = vld [vmem:[#allocation8 + $0x30] sm:$0xff]  ;;  %v797_v26 = vld [vmem:[#allocation8 + $0x78] sm:$0xff] }
  0x5e   :  { %668 = vmatprep.subr.bf16.mxu1 %v1184_v49  ;;  %v789_v49 = vld [vmem:[#allocation8 + $0x38] sm:$0xff]  ;;  %v796_v25 = vld [vmem:[#allocation8 + $0x70] sm:$0xff] }
  0x60   :  { %712 = vmatpush1.bf16.msra.mxu0 %v1114_v34  ;;  %v802_v34 = vld [vmem:[#allocation8 + $0xa0] sm:$0xff] }
  0x61   :  { %713 = vmatprep.subr.bf16.mxu0 %v1115_v35  ;;  %669 = vmatpush1.bf16.msra.mxu1 %v1186_v52  ;;  %v803_v35 = vld [vmem:[#allocation8 + $0xa8] sm:$0xff] }
  0x62   :  { %670 = vmatprep.subr.bf16.mxu1 %v1190_v53  ;;  %v1181_v52 = vld [vmem:[#allocation6 + $0x280] ss:$8 sps:$4 sm:$0xff]   ;;  %v1189_v53 = vld [vmem:[#allocation6 + $0x294] ss:$8 sps:$4 sm:$0xff]  }
  0x64   :  { %714 = vmatpush1.bf16.msra.mxu0 %v1117_v38  ;;  %v1044_v38 = vpack.c.bf16 %v785_v33, %v784_v32 }
  0x65   :  { %715 = vmatprep.subr.bf16.mxu0 %v1118_v39  ;;  %671 = vmatpush1.bf16.msra.mxu1 %v1192_v57  ;;  %v1046_v39 = vpack.c.bf16 %v803_v35, %v802_v34  ;;  %v791_v57 = vld [vmem:[#allocation8 + $0x48] sm:$0xff] }
  0x66   :  { %672 = vmatprep.subr.bf16.mxu1 %v1196_v58  ;;  %v808_v58 = vld [vmem:[#allocation8 + $0xd0] sm:$0xff] }
  0x68   :  { %716 = vmatpush1.bf16.msra.mxu0 %v1120_v42  ;;  %v804_v42 = vld [vmem:[#allocation8 + $0xb0] sm:$0xff] }
  0x69   :  { %717 = vmatprep.subr.bf16.mxu0 %v1121_v43  ;;  %673 = vmatpush1.bf16.msra.mxu1 %v1198_v63  ;;  %v805_v43 = vld [vmem:[#allocation8 + $0xb8] sm:$0xff] }
  0x6a   :  { %674 = vmatprep.subr.bf16.mxu1 %v1202_v1  ;;  %v793_v1 = vld [vmem:[#allocation8 + $0x58] sm:$0xff] }
  0x6c   :  { %718 = vmatpush1.bf16.msra.mxu0 %v1123_v46  ;;  %v1048_v46 = vpack.c.bf16 %v787_v41, %v786_v40 }
  0x6d   :  { %719 = vmatprep.subr.bf16.mxu0 %v1124_v47  ;;  %675 = vmatpush1.bf16.msra.mxu1 %v1204_v6  ;;  %v1050_v47 = vpack.c.bf16 %v805_v43, %v804_v42  ;;  %v1207_v6 = vld [vmem:[#allocation6 + $0x2c4] ss:$8 sps:$4 sm:$0xff]  }
  0x6e   :  { %676 = vmatprep.subr.bf16.mxu1 %v1208_v7  ;;  %v1205_v7 = vld [vmem:[#allocation6 + $0x2c0] ss:$8 sps:$4 sm:$0xff]  }
  0x70   :  { %720 = vmatpush1.bf16.msra.mxu0 %v1126_v50  ;;  %v806_v50 = vld [vmem:[#allocation8 + $0xc0] sm:$0xff] }
  0x71   :  { %721 = vmatprep.subr.bf16.mxu0 %v1127_v51  ;;  %677 = vmatpush1.bf16.msra.mxu1 %v1210_v10  ;;  %v807_v51 = vld [vmem:[#allocation8 + $0xc8] sm:$0xff] }
  0x72   :  { %678 = vmatprep.subr.bf16.mxu1 %v1214_v11  ;;  %v1054_v55 = vpack.c.bf16 %v807_v51, %v806_v50  ;;  %v1219_v10 = vld [vmem:[#allocation6 + $0x2e4] ss:$8 sps:$4 sm:$0xff]   ;;  %v1217_v11 = vld [vmem:[#allocation6 + $0x2e0] ss:$8 sps:$4 sm:$0xff]  }
  0x74   :  { %722 = vmatpush1.bf16.msra.mxu0 %v1131_v54  ;;  %v1052_v54 = vpack.c.bf16 %v789_v49, %v788_v48 }
  0x75   :  { %732 = vmatprep.subr.bf16.mxu0 %v1135_v56  ;;  %679 = vmatpush1.bf16.msra.mxu1 %v1216_v14  ;;  %v790_v56 = vld [vmem:[#allocation8 + $0x40] sm:$0xff]  ;;  %v64_v14 = vld [vmem:[#allocation3 + $0x20] sm:$0xff] }
  0x76   :  { %680 = vmatprep.subr.bf16.mxu1 %v1220_v15  ;;  %v70_v15 = vpack.c.bf16 %v64_v14, %v64_v14 }
  0x77   :  { %724 = vmatmul.mubr.bf16.vlgmr.msra.gmra.mrb[0].mxu0 %v68_v59  ;;  %v809_v59 = vld [vmem:[#allocation8 + $0xd8] sm:$0xff] }
  0x78   :  { %733 = vmatpush1.bf16.msra.mxu0 %v1133_v60  ;;  %764 = vmatprep.mubr.bf16.mxu0 %v71_v3  ;;  %v1187_v60 = vld [vmem:[#allocation6 + $0x290] ss:$8 sps:$4 sm:$0xff]   ;;  %v1058_v63 = vpack.c.bf16 %v809_v59, %v808_v58  ;;  %v1201_v3 = vld [vmem:[#allocation6 + $0x2b4] ss:$8 sps:$4 sm:$0xff]  }
  0x79   :  { %734 = vmatprep.subr.bf16.mxu0 %v1141_v62  ;;  %681 = vmatpush1.bf16.msra.mxu1 %v1222_v20  ;;  %v1056_v62 = vpack.c.bf16 %v791_v57, %v790_v56  ;;  %v795_v20 = vld [vmem:[#allocation8 + $0x68] sm:$0xff] }
  0x7a   :  { %1039 = vmatprep.subr.bf16.mxu1 %v1038_v22  ;;  %v812_v22 = vld [vmem:[#allocation8 + $0xf0] sm:$0xff] }
  0x7b   :  { %v1066_v24 = vpack.c.bf16 %v813_v23, %v812_v22 }
  0x7c   :  { %735 = vmatpush1.bf16.msra.mxu0 %v1139_v4  ;;  %683 = vmatmul.mubr.bf16.vlgmr.msra.gmra.mrb[0].mxu1 %v66_v28  ;;  %v1060_v4 = vpack.c.bf16 %v793_v1, %v792_v0 }
  0x7d   :  { %736 = vmatprep.subr.bf16.mxu0 %v1147_v5  ;;  %1041 = vmatpush3.bf16.msra.mxu1 %v1040_v30  ;;  %v1199_v5 = vld [vmem:[#allocation6 + $0x2b0] ss:$8 sps:$4 sm:$0xff]  }
  0x7e   :  { %1043 = vmatprep.subr.bf16.mxu1 %v1042_v31 }
  0x80   :  { %737 = vmatpush1.bf16.msra.mxu0 %v1145_v8  ;;  %v1213_v8 = vld [vmem:[#allocation6 + $0x2d4] ss:$8 sps:$4 sm:$0xff]  }
  0x81   :  { %738 = vmatprep.subr.bf16.mxu0 %v1153_v9  ;;  %1045 = vmatpush3.bf16.msra.mxu1 %v1044_v38  ;;  %v1211_v9 = vld [vmem:[#allocation6 + $0x2d0] ss:$8 sps:$4 sm:$0xff]  }
  0x82   :  { %1047 = vmatprep.subr.bf16.mxu1 %v1046_v39 }
  0x84   :  { %739 = vmatpush1.bf16.msra.mxu0 %v1151_v12  ;;  %v1225_v12 = vld [vmem:[#allocation6 + $0x2f4] ss:$8 sps:$4 sm:$0xff]  }
  0x85   :  { %740 = vmatprep.subr.bf16.mxu0 %v1159_v13  ;;  %1049 = vmatpush3.bf16.msra.mxu1 %v1048_v46  ;;  %v1223_v13 = vld [vmem:[#allocation6 + $0x2f0] ss:$8 sps:$4 sm:$0xff]  }
  0x86   :  { %1051 = vmatprep.subr.bf16.mxu1 %v1050_v47 }
  0x88   :  { %741 = vmatpush1.bf16.msra.mxu0 %v1157_v18  ;;  %v1062_v18 = vpack.c.bf16 %v811_v17, %v810_v16 }
  0x89   :  { %742 = vmatprep.subr.bf16.mxu0 %v1165_v19  ;;  %1053 = vmatpush3.bf16.msra.mxu1 %v1052_v54  ;;  %v794_v19 = vld [vmem:[#allocation8 + $0x60] sm:$0xff] }
  0x8a   :  { %1055 = vmatprep.subr.bf16.mxu1 %v1054_v55  ;;  %v1064_v21 = vpack.c.bf16 %v795_v20, %v794_v19 }
  0x8c   :  { %743 = vmatpush1.bf16.msra.mxu0 %v1163_v27  ;;  %v1068_v27 = vpack.c.bf16 %v797_v26, %v796_v25 }
  0x8d   :  { %744 = vmatprep.subr.bf16.mxu0 %v1171_v29  ;;  %1057 = vmatpush3.bf16.msra.mxu1 %v1056_v62 }
  0x8e   :  { %1059 = vmatprep.subr.bf16.mxu1 %v1058_v63 }
  0x90   :  { %745 = vmatpush1.bf16.msra.mxu0 %v1169_v36 }
  0x91   :  { %746 = vmatprep.subr.bf16.mxu0 %v1177_v37  ;;  %1061 = vmatpush3.bf16.msra.mxu1 %v1060_v4 }
  0x92   :  { %1063 = vmatprep.subr.bf16.mxu1 %v1062_v18 }
  0x94   :  { %747 = vmatpush1.bf16.msra.mxu0 %v1175_v44 }
  0x95   :  { %748 = vmatprep.subr.bf16.mxu0 %v1183_v45  ;;  %1065 = vmatpush3.bf16.msra.mxu1 %v1064_v21 }
  0x96   :  { %1067 = vmatprep.subr.bf16.mxu1 %v1066_v24 }
  0x98   :  { %749 = vmatpush1.bf16.msra.mxu0 %v1181_v52 }
  0x99   :  { %750 = vmatprep.subr.bf16.mxu0 %v1189_v53  ;;  %1069 = vmatpush3.bf16.msra.mxu1 %v1068_v27 }
  0x9c   :  { %751 = vmatpush1.bf16.msra.mxu0 %v1187_v60 }
  0x9d   :  { %752 = vmatprep.subr.bf16.mxu0 %v1195_v61 }
  0xa0   :  { %753 = vmatpush1.bf16.msra.mxu0 %v1193_v2 }
  0xa1   :  { %754 = vmatprep.subr.bf16.mxu0 %v1201_v3 }
  0xa4   :  { %755 = vmatpush1.bf16.msra.mxu0 %v1199_v5 }
  0xa5   :  { %756 = vmatprep.subr.bf16.mxu0 %v1207_v6 }
  0xa8   :  { %757 = vmatpush1.bf16.msra.mxu0 %v1205_v7 }
  0xa9   :  { %758 = vmatprep.subr.bf16.mxu0 %v1213_v8 }
  0xac   :  { %759 = vmatpush1.bf16.msra.mxu0 %v1211_v9 }
  0xad   :  { %760 = vmatprep.subr.bf16.mxu0 %v1219_v10 }
  0xb0   :  { %761 = vmatpush1.bf16.msra.mxu0 %v1217_v11 }
  0xb1   :  { %762 = vmatprep.subr.bf16.mxu0 %v1225_v12 }
  0xb4   :  { %763 = vmatpush1.bf16.msra.mxu0 %v1223_v13 }
  0xb7   :  { %765 = vmatmul.mubr.bf16.vlgmr.msra.gmra.mrb[0].mxu0 %v70_v15 }
 0x14f   :  { %v684_v28 = vpop.f32.mrb[0].mxu1 }
 0x150   :  { %v686_v29 = vpop.f32.mrb[1].mxu1 }
 0x151   :  { %v688_v30 = vpop.f32.mrb[2].mxu1 }
 0x152   :  { %v689_v31 = vpop.f32.mrb[3].mxu1 }
 0x18a   :  { %v766_v32 = vpop.f32.mrb[0].mxu0 }
 0x18b   :  { %v1070_v33 = vadd.f32 %v766_v32, %v684_v28  ;;  %v768_v34 = vpop.f32.mrb[1].mxu0 }
 0x18c   :  { %v1071_v35 = vadd.f32 %v768_v34, %v686_v29  ;;  %v770_v36 = vpop.f32.mrb[2].mxu0 }
 0x18d   :  { %v771_v37 = vpop.f32.mrb[3].mxu0 }
 0x18e   :  { %878 = vmatprep.mubr.f32.mxu1 %v1071_v35 }
 0x18f   :  { %879 = vmatmul.mubr.f32.vlgmr.msra.gmra.mrb[4].mxu1 %v1070_v33 }
 0x262   :  { %v1035_v38 = vpop.f32.mrb[4].mxu1 }
 0x263   :  { %v1036_v39 = vpop.f32.mrb[5].mxu1 }
 0x264   :  { %v1037_v40 = vadd.f32 %v1036_v39, %v1035_v38 }
 0x266   :  { %v884_v41 = vmul.f32 %v1037_v40, %v1037_v40 }
 0x268   :  { %885 = vadd.xlane.f32.xlu0 %v884_v41 }
 0x2f5   :  { %v886_v42 = vpop.xlane.xlu0 %885 }
 0x2f6   :  { %v887_v43 = vmax.f32 %v886_v42, 1e-24 }
 0x2f8   :  { %1226 = vrsqrt.f32 %v887_v43 }
 0x302   :  { %v1227_v44 = vpop.eup %1226 }
 0x303   :  { %v889_v45 = vmul.f32 %v1227_v44, %v1037_v40 }
 0x305   :  { %890 = vst [vmem:[#allocation9] sm:$0xff] %v889_v45 }
 0x306   :  { %1305 = shalt.err (!%p1302_p0)
}
 0x307   :  { %s1306_s25 = scalar_lea.hbm %s1405_s3, 128 }
 0x308   :  { %p1307_p1 = scmp.ne.s32.totalorder %s1405_s3, %s1306_s25  ;;  %p1310_p2 = scmp.lt.u32.totalorder %s1306_s25, %s1405_s3 }
 0x30a   :  { %p1312_p3 = pnand %p1310_p2, %p1307_p1 }
 0x30c   :  { %1315 = shalt.err (!%p1312_p3)
}
 0x30d   :  { %900 = dma.vmem_to_hbm [thread:$0]  %s898_s21, 128, %s1405_s3, [#allocation5]  }
 0x30e   :  { %1320 = dma.done.wait [#allocation5], 128  }
 0x30f   :  { %1321 = vsyncadd [#allocation5], 4294967168 }
 0x310   :  { %904 = vsyncpa [#allocation4], 1 }
 0x311   :  { %905 = vsyncpa [#allocation7], 1 }
 0x312   :  { %906 = vsyncpa [#allocation5], 1 }

</bundles_post_ra>
